<compile_context>
chip_gen: v6e
topology: v6e:2x2x1
jax: 0.10.0
libtpu: 0.0.40
codegen_flags: <defaults>
</compile_context>

<pallas_src>
import functools

import jax
import jax.numpy as jnp
from jax.experimental import pallas as pl
from jax.experimental.pallas import tpu as pltpu


def _classifier_kernel(x_ref, w_ref, o_ref, *, inv_temp, num_class):
    # x_ref: (TB, inc)        VMEM, walks the batch axis
    # w_ref: (inc, n_pad)     VMEM, resident across the grid (padded classes = 0)
    # o_ref: (TB, num_class)  VMEM
    acc = jnp.dot(x_ref[...], w_ref[...], preferred_element_type=jnp.float32)
    # Slice away padded class columns before the scale + store so padded
    # logits never reach HBM; scale in f32 (v5e has no bf16 VPU), then cast.
    o_ref[...] = (acc[:, :num_class] * inv_temp).astype(o_ref.dtype)


def _pick_batch_tile(B):
    """Batch tile: big (amortize ~0.35 us/step), but >= 2 steps when splittable.

    VMEM is 15x+ under-used even with TB=2048 (see header comment); the only
    reasons to bound TB are (a) giving v7x's two TensorCores >= 1 step each
    and (b) keeping the last partial tile's waste small.
    """
    MAX_TB = 2048
    MIN_TB = 128
    if B <= MIN_TB:
        return B  # single step; too small to be worth splitting across cores
    half = -(-B // 2)              # cdiv(B, 2) -> aim for >= 2 grid steps
    tb = ((half + 7) // 8) * 8     # round up to a sublane multiple
    return max(MIN_TB, min(tb, MAX_TB))


def classifier_forward(x, weight, temp=0.05, reverse=False, eta=0.1):
    """x: (B, inc), weight: (num_class, inc) -> (B, num_class)."""
    del reverse, eta  # forward-pass identity (see TODO above)
    B, inc = x.shape
    num_class, inc_w = weight.shape
    assert inc == inc_w

    # One-time weight prep in the wrapper: zero-pad classes to a 128-lane
    # multiple and transpose to (inc, n_pad) so the kernel's resident operand
    # is lane-dense and the matmul is a plain (non-trans-B) MXU dot.
    n_pad = ((num_class + 127) // 128) * 128
    w_padT = (
        jnp.zeros((inc, n_pad), dtype=weight.dtype)
        .at[:, :num_class]
        .set(weight.T)
    )

    tb = _pick_batch_tile(B)
    grid = (pl.cdiv(B, tb),)
    inv_temp = float(1.0 / temp)
    out_dtype = x.dtype

    kernel = functools.partial(
        _classifier_kernel, inv_temp=inv_temp, num_class=num_class
    )

    cost = pl.CostEstimate(
        flops=2 * B * inc * n_pad,
        transcendentals=0,
        bytes_accessed=(
            x.dtype.itemsize * B * inc
            + w_padT.dtype.itemsize * inc * n_pad
            + jnp.dtype(out_dtype).itemsize * B * num_class
        ),
    )

    return pl.pallas_call(
        kernel,
        out_shape=jax.ShapeDtypeStruct((B, num_class), out_dtype),
        grid_spec=pltpu.PrefetchScalarGridSpec(
            num_scalar_prefetch=0,
            grid=grid,
            in_specs=[
                pl.BlockSpec((tb, inc), lambda i: (i, 0)),      # x tile (walks batch)
                pl.BlockSpec((inc, n_pad), lambda i: (0, 0)),   # resident padded W^T
            ],
            out_specs=pl.BlockSpec((tb, num_class), lambda i: (i, 0)),
        ),
        compiler_params=pltpu.CompilerParams(
            dimension_semantics=("parallel",),
            vmem_limit_bytes=32 * 1024 * 1024,  # explicit; we use well under this
        ),
        cost_estimate=cost,
    )(x, w_padT)


if __name__ == "__main__":
    # Module defaults: num_class=11, inc=512, temp=0.05
    num_class, inc, temp = 11, 512, 0.05
    batch = 4

    key = jax.random.PRNGKey(0)
    kx, kw = jax.random.split(key)
    x = jax.random.normal(kx, (batch, inc), dtype=jnp.float32)
    # Deterministic synthetic weight (matches nn.Linear(inc, num_class, bias=False))
    weight = jax.random.normal(kw, (num_class, inc), dtype=jnp.float32) * 0.02

    out = classifier_forward(x, weight, temp=temp)
    out = jax.block_until_ready(out)

    # Reference check in plain JAX
    ref = (x @ weight.T) / temp
    assert out.shape == (batch, num_class)
    assert jnp.allclose(out, ref, atol=1e-3, rtol=1e-3)

    # Also exercise the multi-step / two-TensorCore path (B > 128, non-divisible)
    xb = jax.random.normal(key, (300, inc), dtype=jnp.float32)
    outb = jax.block_until_ready(classifier_forward(xb, weight, temp=temp))
    refb = (xb @ weight.T) / temp
    assert outb.shape == (300, num_class)
    assert jnp.allclose(outb, refb, atol=1e-3, rtol=1e-3)

    print("KERNEL_OK")
</pallas_src>

<mosaic_0001>
module attributes {stable_mosaic.version = 11 : i64} {
  func.func @_classifier_kernel(%arg0: i32, %arg1: memref<4x512xf32, #tpu.memory_space<vmem>>, %arg2: memref<512x128xf32, #tpu.memory_space<vmem>>, %arg3: memref<4x11xf32, #tpu.memory_space<vmem>>) attributes {dimension_semantics = [#tpu.dimension_semantics<parallel>], iteration_bounds = array<i64: 1>, scalar_prefetch = 0 : i64, scratch_operands = 0 : i64, tpu.core_type = #tpu.core_type<tc>, window_params = [{transform_indices = @transform_0, window_bounds = array<i64: 4, 512>}, {pipeline_mode = #tpu.pipeline_mode<synchronous>, transform_indices = @transform_1, window_bounds = array<i64: 512, 128>}, {transform_indices = @transform_2, window_bounds = array<i64: 4, 11>}]} {
    %c0 = arith.constant 0 : index
    %c0_0 = arith.constant 0 : index
    %0 = vector.load %arg1[%c0, %c0_0] : memref<4x512xf32, #tpu.memory_space<vmem>>, vector<4x512xf32>
    %c0_1 = arith.constant 0 : index
    %c0_2 = arith.constant 0 : index
    %1 = vector.load %arg2[%c0_1, %c0_2] : memref<512x128xf32, #tpu.memory_space<vmem>>, vector<512x128xf32>
    %cst = arith.constant dense<0.000000e+00> : vector<4x128xf32>
    %2 = tpu.matmul %0, %1, %cst {dimension_numbers = #tpu.dot_dimension_numbers<[1], [0], [0], [1], [0, 0, 1, 1], [], []>} : vector<4x512xf32>, vector<512x128xf32>, vector<4x128xf32> -> vector<4x128xf32>
    %3 = vector.extract_strided_slice %2 {offsets = [0, 0], sizes = [4, 11], strides = [1, 1]} : vector<4x128xf32> to vector<4x11xf32>
    %cst_3 = arith.constant 2.000000e+01 : f32
    %4 = vector.broadcast %cst_3 : f32 to vector<4x11xf32>
    %5 = arith.mulf %3, %4 : vector<4x11xf32>
    %c0_4 = arith.constant 0 : index
    %c0_5 = arith.constant 0 : index
    %6 = vector.load %arg3[%c0_4, %c0_5] : memref<4x11xf32, #tpu.memory_space<vmem>>, vector<4x11xf32>
    tpu.vector_store %arg3[%c0_4, %c0_5], %5 {strides = array<i32>} : memref<4x11xf32, #tpu.memory_space<vmem>>, vector<4x11xf32>,
    return
  }
  func.func @transform_0(%arg0: i32) -> (i32, i32) {
    %c0_i32 = arith.constant 0 : i32
    %c0_i32_0 = arith.constant 0 : i32
    return %arg0, %c0_i32 : i32, i32
  }
  func.func @transform_1(%arg0: i32) -> (i32, i32) {
    %c0_i32 = arith.constant 0 : i32
    %c0_i32_0 = arith.constant 0 : i32
    %c0_i32_1 = arith.constant 0 : i32
    return %c0_i32, %c0_i32_0 : i32, i32
  }
  func.func @transform_2(%arg0: i32) -> (i32, i32) {
    %c0_i32 = arith.constant 0 : i32
    %c0_i32_0 = arith.constant 0 : i32
    return %arg0, %c0_i32 : i32, i32
  }
}

</mosaic_0001>

<bundles_post_ra>
// kernel: tpu_custom_call.1
= control target key start
LH: loop header
LB: loop body
LE: loop exit
PB: predicated region body
PF: predicated region fallthrough
CT: control target
= control target key end

     0   :  { %7 = vsyncpa [#allocation3], 0  ;;  %s441_s0 = inlined_call_operand.hbm [shape: f32[4,512], index: 0, kind: input, shape index: {}]   ;;  %s442_s1 = inlined_call_operand.hbm [shape: f32[512,128], index: 1, kind: input, shape index: {}]   ;;  %s443_s2 = inlined_call_operand.hbm [shape: f32[4,11], index: 2, kind: output, shape index: {}]  }
   0x1   :  { %8 = vsyncpa [#allocation6], 0 }
   0x2   :  { %9 = vsyncpa [#allocation4], 0  ;;  %s412_s9 = smov [#allocation2]   ;;  %s413_s11 = smov [#allocation5]  }
   0x3   :  { %s16_s10 = sshll.u32 %s412_s9, 4  ;;  %s25_s12 = sshll.u32 %s413_s11, 4  ;;  %s17_s10 = int_to_ptr.vmem [resolvable:$true] %s16_s10  ;;  %s26_s12 = int_to_ptr.vmem [resolvable:$true] %s25_s12 }
   0x4   :  { %s354_s13 = scalar_lea.vmem %s17_s10, 256  ;;  %p359_p1 = scmp.lt.s32.totalorder %s17_s10, %s17_s10 }
   0x5   :  { %p355_p0 = scmp.ne.s32.totalorder %s17_s10, %s354_s13  ;;  %p360_p2 = scmp.lt.s32.totalorder %s354_s13, %s354_s13 }
   0x7   :  { %p361_p3 = por %p360_p2, %p359_p1 }
   0x9   :  { %p362_p4 = pnand %p361_p3, %p355_p0 }
   0xb   :  { %365 = shalt.err (!%p362_p4)
}
   0xc   :  { %19 = dma.hbm_to_vmem [thread:$0]  %s441_s0, 256, %s17_s10, [#allocation3]  }
   0xd   :  { %s374_s16 = scalar_lea.vmem %s26_s12, 8192  ;;  %p379_p6 = scmp.lt.s32.totalorder %s26_s12, %s26_s12 }
   0xe   :  { %p375_p5 = scmp.ne.s32.totalorder %s26_s12, %s374_s16  ;;  %p380_p7 = scmp.lt.s32.totalorder %s374_s16, %s374_s16 }
  0x10   :  { %p381_p8 = por %p380_p7, %p379_p6 }
  0x12   :  { %p382_p9 = pnand %p381_p8, %p375_p5 }
  0x14   :  { %385 = shalt.err (!%p382_p9)
}
  0x15   :  { %s414_s17 = smov 128   ;;  %s415_s18 = smov 8  }
  0x16   :  { %31 = dma.hbm_to_vmem [thread:$0]  %s442_s1, 8192, %s26_s12, [#allocation6], %s414_s17, %s414_s17, %s415_s18  }
  0x17   :  { %406 = dma.done.wait [#allocation3], 256  }
  0x18   :  { %407 = vsyncadd [#allocation3], 4294967040 }
  0x19   :  { %408 = dma.done.wait [#allocation6], 8192  }
  0x1a   :  { %409 = vsyncadd [#allocation6], 4294959104  ;;  %v71_v0 = vld [vmem:[#allocation5 + $0xf8] sm:$0xff]  ;;  %v70_v4 = vld [vmem:[#allocation5 + $0xf0] sm:$0xff]  ;;  %s416_s0 = smov [#allocation7]   ;;  %vm251_vm0 = vcmask 84992  }
  0x1b   :  { %v103_v1 = vld [vmem:[#allocation5 + $0x1f8] sm:$0xff]  ;;  %269 = vmatprep.subr.mxu0 %v71_v0  ;;  %v102_v5 = vld [vmem:[#allocation5 + $0x1f0] sm:$0xff]  ;;  %v69_v8 = vld [vmem:[#allocation5 + $0xe8] sm:$0xff]  ;;  %s259_s1 = sshll.u32 %s416_s0, 4  ;;  %s260_s1 = int_to_ptr.vmem [resolvable:$true] %s259_s1 }
  0x1c   :  { %v55_v2 = vld [vmem:[#allocation5 + $0x78] sm:$0xff]  ;;  %304 = vmatprep.subr.mxu1 %v103_v1  ;;  %v54_v6 = vld [vmem:[#allocation5 + $0x70] sm:$0xff]  ;;  %v101_v9 = vld [vmem:[#allocation5 + $0x1e8] sm:$0xff]  ;;  %s386_s21 = scalar_lea.vmem %s260_s1, 64  ;;  %p391_p11 = scmp.lt.s32.totalorder %s260_s1, %s260_s1 }
  0x1d   :  { %v87_v3 = vld [vmem:[#allocation5 + $0x178] sm:$0xff]  ;;  %270 = vmatpush3.msra.mxu0 %v55_v2  ;;  %v86_v7 = vld [vmem:[#allocation5 + $0x170] sm:$0xff]  ;;  %v53_v10 = vld [vmem:[#allocation5 + $0x68] sm:$0xff]  ;;  %p387_p10 = scmp.ne.s32.totalorder %s260_s1, %s386_s21  ;;  %p392_p12 = scmp.lt.s32.totalorder %s386_s21, %s386_s21 }
  0x1e   :  { %305 = vmatpush3.msra.mxu1 %v87_v3  ;;  %271 = vmatprep.subr.mxu0 %v70_v4  ;;  %v85_v11 = vld [vmem:[#allocation5 + $0x168] sm:$0xff]  ;;  %v68_v12 = vld [vmem:[#allocation5 + $0xe0] sm:$0xff]  ;;  %v67_v16 = vld [vmem:[#allocation5 + $0xd8] sm:$0xff] }
  0x1f   :  { %306 = vmatprep.subr.mxu1 %v102_v5  ;;  %272 = vmatpush3.msra.mxu0 %v54_v6  ;;  %v100_v13 = vld [vmem:[#allocation5 + $0x1e0] sm:$0xff]  ;;  %v99_v17 = vld [vmem:[#allocation5 + $0x1d8] sm:$0xff]  ;;  %v66_v20 = vld [vmem:[#allocation5 + $0xd0] sm:$0xff]  ;;  %p393_p13 = por %p392_p12, %p391_p11 }
  0x20   :  { %307 = vmatpush3.msra.mxu1 %v86_v7  ;;  %273 = vmatprep.subr.mxu0 %v69_v8  ;;  %v52_v14 = vld [vmem:[#allocation5 + $0x60] sm:$0xff]  ;;  %v51_v18 = vld [vmem:[#allocation5 + $0x58] sm:$0xff]  ;;  %v98_v21 = vld [vmem:[#allocation5 + $0x1d0] sm:$0xff] }
  0x21   :  { %308 = vmatprep.subr.mxu1 %v101_v9  ;;  %v84_v15 = vld [vmem:[#allocation5 + $0x160] sm:$0xff]  ;;  %274 = vmatpush3.msra.mxu0 %v53_v10  ;;  %v83_v19 = vld [vmem:[#allocation5 + $0x158] sm:$0xff]  ;;  %v50_v22 = vld [vmem:[#allocation5 + $0x50] sm:$0xff]  ;;  %p394_p0 = pnand %p393_p13, %p387_p10 }
  0x22   :  { %309 = vmatpush3.msra.mxu1 %v85_v11  ;;  %275 = vmatprep.subr.mxu0 %v68_v12  ;;  %v82_v23 = vld [vmem:[#allocation5 + $0x150] sm:$0xff]  ;;  %v65_v24 = vld [vmem:[#allocation5 + $0xc8] sm:$0xff]  ;;  %v64_v28 = vld [vmem:[#allocation5 + $0xc0] sm:$0xff] }
  0x23   :  { %310 = vmatprep.subr.mxu1 %v100_v13  ;;  %276 = vmatpush3.msra.mxu0 %v52_v14  ;;  %v97_v25 = vld [vmem:[#allocation5 + $0x1c8] sm:$0xff]  ;;  %v96_v29 = vld [vmem:[#allocation5 + $0x1c0] sm:$0xff]  ;;  %v63_v32 = vld [vmem:[#allocation5 + $0xb8] sm:$0xff] }
  0x24   :  { %311 = vmatpush3.msra.mxu1 %v84_v15  ;;  %277 = vmatprep.subr.mxu0 %v67_v16  ;;  %v49_v26 = vld [vmem:[#allocation5 + $0x48] sm:$0xff]  ;;  %v48_v30 = vld [vmem:[#allocation5 + $0x40] sm:$0xff]  ;;  %v95_v33 = vld [vmem:[#allocation5 + $0x1b8] sm:$0xff] }
  0x25   :  { %312 = vmatprep.subr.mxu1 %v99_v17  ;;  %278 = vmatpush3.msra.mxu0 %v51_v18  ;;  %v81_v27 = vld [vmem:[#allocation5 + $0x148] sm:$0xff]  ;;  %v80_v31 = vld [vmem:[#allocation5 + $0x140] sm:$0xff]  ;;  %v47_v34 = vld [vmem:[#allocation5 + $0x38] sm:$0xff] }
  0x26   :  { %313 = vmatpush3.msra.mxu1 %v83_v19  ;;  %279 = vmatprep.subr.mxu0 %v66_v20  ;;  %v79_v35 = vld [vmem:[#allocation5 + $0x138] sm:$0xff]  ;;  %v62_v36 = vld [vmem:[#allocation5 + $0xb0] sm:$0xff]  ;;  %v61_v40 = vld [vmem:[#allocation5 + $0xa8] sm:$0xff] }
  0x27   :  { %314 = vmatprep.subr.mxu1 %v98_v21  ;;  %280 = vmatpush3.msra.mxu0 %v50_v22  ;;  %v94_v37 = vld [vmem:[#allocation5 + $0x1b0] sm:$0xff]  ;;  %v93_v41 = vld [vmem:[#allocation5 + $0x1a8] sm:$0xff]  ;;  %v60_v44 = vld [vmem:[#allocation5 + $0xa0] sm:$0xff] }
  0x28   :  { %315 = vmatpush3.msra.mxu1 %v82_v23  ;;  %281 = vmatprep.subr.mxu0 %v65_v24  ;;  %v46_v38 = vld [vmem:[#allocation5 + $0x30] sm:$0xff]  ;;  %v45_v42 = vld [vmem:[#allocation5 + $0x28] sm:$0xff]  ;;  %v92_v45 = vld [vmem:[#allocation5 + $0x1a0] sm:$0xff] }
  0x29   :  { %316 = vmatprep.subr.mxu1 %v97_v25  ;;  %282 = vmatpush3.msra.mxu0 %v49_v26  ;;  %v78_v39 = vld [vmem:[#allocation5 + $0x130] sm:$0xff]  ;;  %v77_v43 = vld [vmem:[#allocation5 + $0x128] sm:$0xff]  ;;  %v44_v46 = vld [vmem:[#allocation5 + $0x20] sm:$0xff] }
  0x2a   :  { %317 = vmatpush3.msra.mxu1 %v81_v27  ;;  %283 = vmatprep.subr.mxu0 %v64_v28  ;;  %v76_v47 = vld [vmem:[#allocation5 + $0x120] sm:$0xff]  ;;  %v59_v48 = vld [vmem:[#allocation5 + $0x98] sm:$0xff]  ;;  %v58_v52 = vld [vmem:[#allocation5 + $0x90] sm:$0xff] }
  0x2b   :  { %318 = vmatprep.subr.mxu1 %v96_v29  ;;  %284 = vmatpush3.msra.mxu0 %v48_v30  ;;  %v91_v49 = vld [vmem:[#allocation5 + $0x198] sm:$0xff]  ;;  %v90_v53 = vld [vmem:[#allocation5 + $0x190] sm:$0xff]  ;;  %v57_v57 = vld [vmem:[#allocation5 + $0x88] sm:$0xff] }
  0x2c   :  { %319 = vmatpush3.msra.mxu1 %v80_v31  ;;  %285 = vmatprep.subr.mxu0 %v63_v32  ;;  %v43_v50 = vld [vmem:[#allocation5 + $0x18] sm:$0xff]  ;;  %v42_v54 = vld [vmem:[#allocation5 + $0x10] sm:$0xff]  ;;  %v89_v58 = vld [vmem:[#allocation5 + $0x188] sm:$0xff] }
  0x2d   :  { %320 = vmatprep.subr.mxu1 %v95_v33  ;;  %286 = vmatpush3.msra.mxu0 %v47_v34  ;;  %v75_v51 = vld [vmem:[#allocation5 + $0x118] sm:$0xff]  ;;  %v74_v55 = vld [vmem:[#allocation5 + $0x110] sm:$0xff]  ;;  %v41_v60 = vld [vmem:[#allocation5 + $0x8] sm:$0xff] }
  0x2e   :  { %321 = vmatpush3.msra.mxu1 %v79_v35  ;;  %287 = vmatprep.subr.mxu0 %v62_v36  ;;  %v38_v56 = vld [vmem:[#allocation2] sm:$0xff]  ;;  %v39_v59 = vld [vmem:[#allocation2 + $0x8] sm:$0xff]  ;;  %v73_v61 = vld [vmem:[#allocation5 + $0x108] sm:$0xff] }
  0x2f   :  { %322 = vmatprep.subr.mxu1 %v94_v37  ;;  %288 = vmatpush3.msra.mxu0 %v46_v38  ;;  %v56_v62 = vld [vmem:[#allocation5 + $0x80] sm:$0xff]  ;;  %v106_v0 = vcombine.high %v38_v56, %v38_v56  ;;  %v107_v2 = vcombine.high %v39_v59, %v39_v59 }
  0x30   :  { %323 = vmatpush3.msra.mxu1 %v78_v39  ;;  %289 = vmatprep.subr.mxu0 %v61_v40  ;;  %v88_v63 = vld [vmem:[#allocation5 + $0x180] sm:$0xff] }
  0x31   :  { %324 = vmatprep.subr.mxu1 %v93_v41  ;;  %290 = vmatpush3.msra.mxu0 %v45_v42  ;;  %v40_v1 = vld [vmem:[#allocation5] sm:$0xff] }
  0x32   :  { %325 = vmatpush3.msra.mxu1 %v77_v43  ;;  %291 = vmatprep.subr.mxu0 %v60_v44  ;;  %v72_v3 = vld [vmem:[#allocation5 + $0x100] sm:$0xff] }
  0x33   :  { %326 = vmatprep.subr.mxu1 %v92_v45  ;;  %292 = vmatpush3.msra.mxu0 %v44_v46 }
  0x34   :  { %327 = vmatpush3.msra.mxu1 %v76_v47  ;;  %293 = vmatprep.subr.mxu0 %v59_v48 }
  0x35   :  { %328 = vmatprep.subr.mxu1 %v91_v49  ;;  %294 = vmatpush3.msra.mxu0 %v43_v50 }
  0x36   :  { %329 = vmatpush3.msra.mxu1 %v75_v51  ;;  %295 = vmatprep.subr.mxu0 %v58_v52 }
  0x37   :  { %330 = vmatprep.subr.mxu1 %v90_v53  ;;  %296 = vmatpush3.msra.mxu0 %v42_v54 }
  0x38   :  { %331 = vmatpush3.msra.mxu1 %v74_v55  ;;  %297 = vmatprep.subr.mxu0 %v57_v57 }
  0x39   :  { %332 = vmatprep.subr.mxu1 %v89_v58  ;;  %298 = vmatpush3.msra.mxu0 %v41_v60 }
  0x3a   :  { %333 = vmatpush3.msra.mxu1 %v73_v61  ;;  %299 = vmatprep.subr.mxu0 %v56_v62 }
  0x3b   :  { %334 = vmatprep.subr.mxu1 %v88_v63  ;;  %300 = vmatpush3.msra.mxu0 %v40_v1 }
  0x3c   :  { %174 = vmatprep.mubr.f32.mxu0 %v106_v0  ;;  %335 = vmatpush3.msra.mxu1 %v72_v3 }
  0x3d   :  { %244 = vmatprep.mubr.f32.mxu1 %v107_v2  ;;  %175 = vmatmul.mubr.f32.vlgmr.msra.gmra.mxu0 %v38_v56 }
  0x3e   :  { %245 = vmatmul.mubr.f32.vlgmr.msra.gmra.mxu1 %v39_v59 }
  0xfd   :  { %v301_v4 = vpop.f32.mrf.mxu0 }
  0xfe   :  { %v336_v5 = vpop.f32.mrf.mxu1 }
  0xff   :  { %v302_v6 = vpop.f32.mrf.mxu0 }
 0x100   :  { %v337_v7 = vpop.f32.mrf.mxu1  ;;  %v303_v8 = vadd.f32 %v302_v6, %v301_v4 }
 0x101   :  { %v338_v9 = vadd.f32 %v337_v7, %v336_v5 }
 0x103   :  { %v247_v10 = vadd.f32 %v338_v9, %v303_v8 }
 0x105   :  { %v250_v11 = vmul.f32 20.0, %v247_v10 }
 0x107   :  { %252 = vst.msk [vmem:[#allocation7] sm:$0xf] %vm251_vm0, %v250_v11 }
 0x108   :  { %397 = shalt.err (!%p394_p0)
}
 0x109   :  { %262 = dma.vmem_to_hbm [thread:$0]  %s260_s1, 64, %s443_s2, [#allocation4]  }
 0x10a   :  { %410 = dma.done.wait [#allocation4], 64  }
 0x10b   :  { %411 = vsyncadd [#allocation4], 4294967232 }
 0x10c   :  { %266 = vsyncpa [#allocation3], 1 }
 0x10d   :  { %267 = vsyncpa [#allocation6], 1 }
 0x10e   :  { %268 = vsyncpa [#allocation4], 1 }

</bundles_post_ra>
